<compile_context>
chip_gen: v7x
topology: tpu7x:2x2x1
jax: 0.10.0
libtpu: 0.0.40
codegen_flags: <defaults>
</compile_context>

<pallas_src>
import functools

import jax
import jax.numpy as jnp
from jax import lax
from jax.experimental import pallas as pl
from jax.experimental.pallas import tpu as pltpu

EPS = 1e-5
LANE = 128
SUBLANE = 8
VMEM_LIMIT = 48 * 1024 * 1024  # above the 16/32 MiB scoped defaults, < v7x 64 MiB


def _round_up(x, m):
    return (x + m - 1) // m * m


def _pick_rows_tile(rows, target):
    """Row tile (multiple of 8) and padded row count for a row-tiled grid."""
    tm = min(_round_up(rows, SUBLANE), _round_up(max(target, SUBLANE), SUBLANE))
    rows_pad = _round_up(rows, tm)
    return tm, rows_pad


def _pad_rows(a, rows_pad):
    r = a.shape[0]
    if rows_pad == r:
        return a
    return jnp.pad(a, ((0, rows_pad - r), (0, 0)))


# ----------------------------- Pallas kernels ------------------------------

def _halfmax_kernel(x_ref, o_ref):
    # elementwise max of the two lane-aligned halves of each row
    half = o_ref.shape[-1]
    x = x_ref[...]
    o_ref[...] = jnp.maximum(x[:, :half], x[:, half:])


def _conv_stats_kernel(p_ref, w_ref, y_ref, sum_ref, sq_ref):
    # pass 1: bf16 MXU matmul (f32 accumulate) + per-channel batch statistics
    # accumulated across row tiles (grid axis is "arbitrary").
    @pl.when(pl.program_id(0) == 0)
    def _():
        sum_ref[...] = jnp.zeros_like(sum_ref)
        sq_ref[...] = jnp.zeros_like(sq_ref)

    y = jnp.dot(p_ref[...], w_ref[...], preferred_element_type=jnp.float32)
    y_ref[...] = y.astype(y_ref.dtype)
    sum_ref[...] += jnp.sum(y, axis=0, keepdims=True)
    sq_ref[...] += jnp.sum(y * y, axis=0, keepdims=True)


def _affine_relu_kernel(y_ref, scale_ref, shift_ref, o_ref):
    # pass 2: folded BatchNorm (one FMA) + ReLU, per row tile.
    z = y_ref[...].astype(jnp.float32) * scale_ref[...] + shift_ref[...]
    o_ref[...] = jnp.maximum(z, 0.0).astype(o_ref.dtype)


# ------------------------------ kernel wrappers -----------------------------

def _pairwise_max(x2d, *, block_rows):
    """x2d: (rows, 2*half). Returns (rows, half) with max over the two halves."""
    rows, two_half = x2d.shape
    half = two_half // 2
    tm, rows_pad = _pick_rows_tile(rows, block_rows)
    xp = _pad_rows(x2d, rows_pad)

    out = pl.pallas_call(
        _halfmax_kernel,
        out_shape=jax.ShapeDtypeStruct((rows_pad, half), x2d.dtype),
        grid=(rows_pad // tm,),
        in_specs=[pl.BlockSpec((tm, two_half), lambda i: (i, 0))],
        out_specs=pl.BlockSpec((tm, half), lambda i: (i, 0)),
        compiler_params=pltpu.CompilerParams(
            dimension_semantics=("parallel",),
            vmem_limit_bytes=VMEM_LIMIT),
    )(xp)
    return out[:rows]


def _conv3x3_bn_relu(a, w_hwio, gamma, beta, *, block_rows):
    """a: (N, H, W, Cin) bf16 -> (N, H-2, W-2, Cout) bf16 (Conv3x3 + BN + ReLU)."""
    N, H, W, Cin = a.shape
    Cout = w_hwio.shape[-1]
    Ho, Wo = H - 2, W - 2
    R = N * Ho * Wo                      # true pixel count (BN denominator)
    K = 9 * Cin
    Kp = _round_up(K, LANE)              # lane-dense contraction dim
    Coutp = _round_up(Cout, LANE)        # lane-dense output channels

    # im2col patches in bf16, zero-padded to Kp columns and to a row multiple
    # of the tile.  Padded rows/cols are zero => they contribute exactly 0 to
    # the matmul and to the BN sums (no conv bias is added in-kernel).
    cols = [a[:, i:i + Ho, j:j + Wo, :] for i in range(3) for j in range(3)]
    if Kp > K:
        cols.append(jnp.zeros((N, Ho, Wo, Kp - K), a.dtype))
    patches = jnp.concatenate(cols, axis=-1).reshape(R, Kp)

    tm, rows_pad = _pick_rows_tile(R, block_rows)
    patches = _pad_rows(patches, rows_pad)
    grid = (rows_pad // tm,)

    wk = (jnp.zeros((Kp, Coutp), jnp.float32)
          .at[:K, :Cout].set(w_hwio.reshape(K, Cout)).astype(jnp.bfloat16))
    g = jnp.zeros((1, Coutp), jnp.float32).at[:, :Cout].set(gamma.reshape(1, Cout))
    b = jnp.zeros((1, Coutp), jnp.float32).at[:, :Cout].set(beta.reshape(1, Cout))

    # ---- pass 1: matmul + batch-statistics accumulation ----
    y, s1, s2 = pl.pallas_call(
        _conv_stats_kernel,
        out_shape=(
            jax.ShapeDtypeStruct((rows_pad, Coutp), jnp.bfloat16),
            jax.ShapeDtypeStruct((1, Coutp), jnp.float32),
            jax.ShapeDtypeStruct((1, Coutp), jnp.float32),
        ),
        grid=grid,
        in_specs=[
            pl.BlockSpec((tm, Kp), lambda i: (i, 0)),        # streamed patches
            pl.BlockSpec((Kp, Coutp), lambda i: (0, 0)),     # resident weights
        ],
        out_specs=(
            pl.BlockSpec((tm, Coutp), lambda i: (i, 0)),     # streamed conv out
            pl.BlockSpec((1, Coutp), lambda i: (0, 0)),      # resident sum acc
            pl.BlockSpec((1, Coutp), lambda i: (0, 0)),      # resident sumsq acc
        ),
        compiler_params=pltpu.CompilerParams(
            dimension_semantics=("arbitrary",),              # stats accumulate
            vmem_limit_bytes=VMEM_LIMIT),
    )(patches, wk)

    # Fold training-mode BN into one scale/shift FMA (tiny (1, C) math in JAX).
    mean = s1 / R
    var = jnp.maximum(s2 / R - mean * mean, 0.0)   # biased variance
    scale = g * lax.rsqrt(var + EPS)
    shift = b - mean * scale

    # ---- pass 2: normalize + ReLU, row-tiled elementwise ----
    out = pl.pallas_call(
        _affine_relu_kernel,
        out_shape=jax.ShapeDtypeStruct((rows_pad, Coutp), jnp.bfloat16),
        grid=grid,
        in_specs=[
            pl.BlockSpec((tm, Coutp), lambda i: (i, 0)),
            pl.BlockSpec((1, Coutp), lambda i: (0, 0)),
            pl.BlockSpec((1, Coutp), lambda i: (0, 0)),
        ],
        out_specs=pl.BlockSpec((tm, Coutp), lambda i: (i, 0)),
        compiler_params=pltpu.CompilerParams(
            dimension_semantics=("parallel",),               # shards across TCs
            vmem_limit_bytes=VMEM_LIMIT),
    )(y, scale, shift)

    return out[:R, :Cout].reshape(N, Ho, Wo, Cout)


# ------------------------------- forward ------------------------------------

def down_forward(x_nchw, params, *, block_rows=512):
    """Forward of Down(in_ch, out_ch): MaxPool2d(2) -> (Conv3x3 -> BN -> ReLU) x2."""
    N, Cin, H, W = x_nchw.shape
    Hp, Wp = H // 2, W // 2

    # NHWC, bf16 activations (MXU-native operands; accumulation stays f32).
    x = jnp.transpose(x_nchw, (0, 2, 3, 1)).astype(jnp.bfloat16)

    # MaxPool2d(2): vertical pair-max then horizontal pair-max, both on
    # contiguous (metadata-only) reshapes with lane-aligned halves.
    v = _pairwise_max(x.reshape(N * Hp, 2 * W * Cin), block_rows=block_rows)
    p = _pairwise_max(v.reshape(N * Hp * Wp, 2 * Cin), block_rows=block_rows)
    pooled = p.reshape(N, Hp, Wp, Cin)

    # Conv2d bias (params b1/b2) is intentionally NOT applied: training-mode
    # BatchNorm mean subtraction cancels it exactly.
    a1 = _conv3x3_bn_relu(pooled, params["w1"], params["g1"], params["bt1"],
                          block_rows=block_rows)
    a2 = _conv3x3_bn_relu(a1, params["w2"], params["g2"], params["bt2"],
                          block_rows=block_rows)

    return jnp.transpose(a2, (0, 3, 1, 2)).astype(jnp.float32)  # back to NCHW


# ------------------------------ params & reference --------------------------

def init_params(key, in_ch, out_ch):
    mid = out_ch  # DoubleConv: mid_ch defaults to out_ch
    ks = jax.random.split(key, 8)
    return {
        # conv weights stored as (kh, kw, Cin, Cout)
        "w1": 0.1 * jax.random.normal(ks[0], (3, 3, in_ch, mid), jnp.float32),
        "b1": 0.05 * jax.random.normal(ks[1], (1, mid), jnp.float32),
        "g1": 1.0 + 0.1 * jax.random.normal(ks[2], (1, mid), jnp.float32),
        "bt1": 0.1 * jax.random.normal(ks[3], (1, mid), jnp.float32),
        "w2": 0.1 * jax.random.normal(ks[4], (3, 3, mid, out_ch), jnp.float32),
        "b2": 0.05 * jax.random.normal(ks[5], (1, out_ch), jnp.float32),
        "g2": 1.0 + 0.1 * jax.random.normal(ks[6], (1, out_ch), jnp.float32),
        "bt2": 0.1 * jax.random.normal(ks[7], (1, out_ch), jnp.float32),
    }


def _reference(x_nchw, params):
    """Independent plain-JAX/XLA f32 reference mirroring the PyTorch forward."""
    def conv_bn_relu_ref(y, w_hwio, b, g, bt):
        w_oihw = jnp.transpose(w_hwio, (3, 2, 0, 1))
        y = lax.conv_general_dilated(
            y, w_oihw, window_strides=(1, 1), padding="VALID",
            dimension_numbers=("NCHW", "OIHW", "NCHW"))
        y = y + b.reshape(1, -1, 1, 1)             # conv bias (cancelled by BN)
        mean = jnp.mean(y, axis=(0, 2, 3), keepdims=True)
        var = jnp.mean((y - mean) ** 2, axis=(0, 2, 3), keepdims=True)
        y = (y - mean) * lax.rsqrt(var + EPS)
        y = y * g.reshape(1, -1, 1, 1) + bt.reshape(1, -1, 1, 1)
        return jnp.maximum(y, 0.0)

    y = lax.reduce_window(x_nchw, -jnp.inf, lax.max,
                          (1, 1, 2, 2), (1, 1, 2, 2), "VALID")
    y = conv_bn_relu_ref(y, params["w1"], params["b1"], params["g1"], params["bt1"])
    y = conv_bn_relu_ref(y, params["w2"], params["b2"], params["g2"], params["bt2"])
    return y


# ----------------------------------- main ------------------------------------

if __name__ == "__main__":
    N, Cin, H, W = 2, 4, 16, 16
    Cout = 8

    x = jax.random.normal(jax.random.PRNGKey(0), (N, Cin, H, W), jnp.float32)
    params = init_params(jax.random.PRNGKey(1), Cin, Cout)

    # block_rows=16 so the toy shapes actually exercise multi-tile grids and the
    # cross-tile BN statistics accumulator (production default is 512 rows).
    fwd = jax.jit(functools.partial(down_forward, block_rows=16))
    out = jax.block_until_ready(fwd(x, params))

    # shape check: 16 -> pool 8 -> conv 6 -> conv 4
    assert out.shape == (N, Cout, 4, 4), out.shape

    ref = _reference(x, params)
    # bf16 MXU operands / bf16 activation storage vs an all-f32 reference:
    # a ~1e-2 tolerance validates structure while allowing bf16 rounding.
    if not bool(jnp.allclose(out, ref, rtol=3e-2, atol=3e-2)):
        raise AssertionError("Pallas result does not match reference")

    print("KERNEL_OK")
</pallas_src>

<mosaic_0001>
module attributes {stable_mosaic.version = 11 : i64} {
  func.func @_halfmax_kernel(%arg0: i32, %arg1: memref<16x128xbf16, #tpu.memory_space<vmem>>, %arg2: memref<16x64xbf16, #tpu.memory_space<vmem>>) attributes {dimension_semantics = [#tpu.dimension_semantics<parallel>], iteration_bounds = array<i64: 1>, scalar_prefetch = 0 : i64, scratch_operands = 0 : i64, tpu.core_type = #tpu.core_type<tc>, window_params = [{transform_indices = @transform_0, window_bounds = array<i64: 16, 128>}, {transform_indices = @transform_1, window_bounds = array<i64: 16, 64>}]} {
    %c0 = arith.constant 0 : index
    %c0_0 = arith.constant 0 : index
    %0 = vector.load %arg1[%c0, %c0_0] : memref<16x128xbf16, #tpu.memory_space<vmem>>, vector<16x128xbf16>
    %1 = vector.extract_strided_slice %0 {offsets = [0, 0], sizes = [16, 64], strides = [1, 1]} : vector<16x128xbf16> to vector<16x64xbf16>
    %2 = vector.extract_strided_slice %0 {offsets = [0, 64], sizes = [16, 64], strides = [1, 1]} : vector<16x128xbf16> to vector<16x64xbf16>
    %3 = arith.maximumf %1, %2 : vector<16x64xbf16>
    %c0_1 = arith.constant 0 : index
    %c0_2 = arith.constant 0 : index
    %4 = vector.load %arg2[%c0_1, %c0_2] : memref<16x64xbf16, #tpu.memory_space<vmem>>, vector<16x64xbf16>
    tpu.vector_store %arg2[%c0_1, %c0_2], %3 {strides = array<i32>} : memref<16x64xbf16, #tpu.memory_space<vmem>>, vector<16x64xbf16>,
    return
  }
  func.func @transform_0(%arg0: i32) -> (i32, i32) {
    %c0_i32 = arith.constant 0 : i32
    %c0_i32_0 = arith.constant 0 : i32
    return %arg0, %c0_i32 : i32, i32
  }
  func.func @transform_1(%arg0: i32) -> (i32, i32) {
    %c0_i32 = arith.constant 0 : i32
    %c0_i32_0 = arith.constant 0 : i32
    return %arg0, %c0_i32 : i32, i32
  }
}

module attributes {stable_mosaic.version = 11 : i64} {
  func.func @_halfmax_kernel(%arg0: i32, %arg1: memref<16x8xbf16, #tpu.memory_space<vmem>>, %arg2: memref<16x4xbf16, #tpu.memory_space<vmem>>) attributes {dimension_semantics = [#tpu.dimension_semantics<parallel>], iteration_bounds = array<i64: 8>, scalar_prefetch = 0 : i64, scratch_operands = 0 : i64, tpu.core_type = #tpu.core_type<tc>, window_params = [{transform_indices = @transform_0, window_bounds = array<i64: 16, 8>}, {transform_indices = @transform_1, window_bounds = array<i64: 16, 4>}]} {
    %c0 = arith.constant 0 : index
    %c0_0 = arith.constant 0 : index
    %0 = vector.load %arg1[%c0, %c0_0] : memref<16x8xbf16, #tpu.memory_space<vmem>>, vector<16x8xbf16>
    %1 = vector.extract_strided_slice %0 {offsets = [0, 0], sizes = [16, 4], strides = [1, 1]} : vector<16x8xbf16> to vector<16x4xbf16>
    %2 = vector.extract_strided_slice %0 {offsets = [0, 4], sizes = [16, 4], strides = [1, 1]} : vector<16x8xbf16> to vector<16x4xbf16>
    %3 = arith.maximumf %1, %2 : vector<16x4xbf16>
    %c0_1 = arith.constant 0 : index
    %c0_2 = arith.constant 0 : index
    %4 = vector.load %arg2[%c0_1, %c0_2] : memref<16x4xbf16, #tpu.memory_space<vmem>>, vector<16x4xbf16>
    tpu.vector_store %arg2[%c0_1, %c0_2], %3 {strides = array<i32>} : memref<16x4xbf16, #tpu.memory_space<vmem>>, vector<16x4xbf16>,
    return
  }
  func.func @transform_0(%arg0: i32) -> (i32, i32) {
    %c0_i32 = arith.constant 0 : i32
    %c0_i32_0 = arith.constant 0 : i32
    return %arg0, %c0_i32 : i32, i32
  }
  func.func @transform_1(%arg0: i32) -> (i32, i32) {
    %c0_i32 = arith.constant 0 : i32
    %c0_i32_0 = arith.constant 0 : i32
    return %arg0, %c0_i32 : i32, i32
  }
}

module attributes {stable_mosaic.version = 11 : i64} {
  func.func @_conv_stats_kernel(%arg0: i32, %arg1: memref<16x128xbf16, #tpu.memory_space<vmem>>, %arg2: memref<128x128xbf16, #tpu.memory_space<vmem>>, %arg3: memref<16x128xbf16, #tpu.memory_space<vmem>>, %arg4: memref<1x128xf32, #tpu.memory_space<vmem>>, %arg5: memref<1x128xf32, #tpu.memory_space<vmem>>) attributes {dimension_semantics = [#tpu.dimension_semantics<arbitrary>], iteration_bounds = array<i64: 5>, scalar_prefetch = 0 : i64, scratch_operands = 0 : i64, tpu.core_type = #tpu.core_type<tc>, window_params = [{transform_indices = @transform_0, window_bounds = array<i64: 16, 128>}, {pipeline_mode = #tpu.pipeline_mode<synchronous>, transform_indices = @transform_1, window_bounds = array<i64: 128, 128>}, {transform_indices = @transform_2, window_bounds = array<i64: 16, 128>}, {pipeline_mode = #tpu.pipeline_mode<synchronous>, transform_indices = @transform_3, window_bounds = array<i64: 1, 128>}, {pipeline_mode = #tpu.pipeline_mode<synchronous>, transform_indices = @transform_4, window_bounds = array<i64: 1, 128>}]} {
    %c0_i32 = arith.constant 0 : i32
    %0 = arith.cmpi eq, %arg0, %c0_i32 : i32
    %1 = arith.extui %0 : i1 to i32
    %c0_i32_0 = arith.constant 0 : i32
    %2 = arith.cmpi ne, %1, %c0_i32_0 : i32
    scf.if %2 {
      %cst_16 = arith.constant 0.000000e+00 : f32
      %19 = vector.broadcast %cst_16 : f32 to vector<1x128xf32>
      %c0_17 = arith.constant 0 : index
      %c0_18 = arith.constant 0 : index
      %20 = vector.load %arg4[%c0_17, %c0_18] : memref<1x128xf32, #tpu.memory_space<vmem>>, vector<1x128xf32>
      tpu.vector_store %arg4[%c0_17, %c0_18], %19 {strides = array<i32>} : memref<1x128xf32, #tpu.memory_space<vmem>>, vector<1x128xf32>,
      %cst_19 = arith.constant 0.000000e+00 : f32
      %21 = vector.broadcast %cst_19 : f32 to vector<1x128xf32>
      %c0_20 = arith.constant 0 : index
      %c0_21 = arith.constant 0 : index
      %22 = vector.load %arg5[%c0_20, %c0_21] : memref<1x128xf32, #tpu.memory_space<vmem>>, vector<1x128xf32>
      tpu.vector_store %arg5[%c0_20, %c0_21], %21 {strides = array<i32>} : memref<1x128xf32, #tpu.memory_space<vmem>>, vector<1x128xf32>,
    } else {
    }
    %c0 = arith.constant 0 : index
    %c0_1 = arith.constant 0 : index
    %3 = vector.load %arg1[%c0, %c0_1] : memref<16x128xbf16, #tpu.memory_space<vmem>>, vector<16x128xbf16>
    %c0_2 = arith.constant 0 : index
    %c0_3 = arith.constant 0 : index
    %4 = vector.load %arg2[%c0_2, %c0_3] : memref<128x128xbf16, #tpu.memory_space<vmem>>, vector<128x128xbf16>
    %cst = arith.constant dense<0.000000e+00> : vector<16x128xf32>
    %5 = tpu.matmul %3, %4, %cst {dimension_numbers = #tpu.dot_dimension_numbers<[1], [0], [0], [1], [0, 0, 1, 1], [], []>} : vector<16x128xbf16>, vector<128x128xbf16>, vector<16x128xf32> -> vector<16x128xf32>
    %6 = arith.truncf %5 : vector<16x128xf32> to vector<16x128xbf16>
    %c0_4 = arith.constant 0 : index
    %c0_5 = arith.constant 0 : index
    %7 = vector.load %arg3[%c0_4, %c0_5] : memref<16x128xbf16, #tpu.memory_space<vmem>>, vector<16x128xbf16>
    tpu.vector_store %arg3[%c0_4, %c0_5], %6 {strides = array<i32>} : memref<16x128xbf16, #tpu.memory_space<vmem>>, vector<16x128xbf16>,
    %c0_6 = arith.constant 0 : index
    %c0_7 = arith.constant 0 : index
    %8 = vector.load %arg4[%c0_6, %c0_7] : memref<1x128xf32, #tpu.memory_space<vmem>>, vector<1x128xf32>
    %cst_8 = arith.constant dense<0.000000e+00> : vector<128xf32>
    %9 = vector.multi_reduction <add>, %5, %cst_8 [0] : vector<16x128xf32> to vector<128xf32>
    %10 = vector.shape_cast %9 : vector<128xf32> to vector<1x128xf32>
    %11 = arith.addf %8, %10 : vector<1x128xf32>
    %c0_9 = arith.constant 0 : index
    %c0_10 = arith.constant 0 : index
    %12 = vector.load %arg4[%c0_9, %c0_10] : memref<1x128xf32, #tpu.memory_space<vmem>>, vector<1x128xf32>
    tpu.vector_store %arg4[%c0_9, %c0_10], %11 {strides = array<i32>} : memref<1x128xf32, #tpu.memory_space<vmem>>, vector<1x128xf32>,
    %c0_11 = arith.constant 0 : index
    %c0_12 = arith.constant 0 : index
    %13 = vector.load %arg5[%c0_11, %c0_12] : memref<1x128xf32, #tpu.memory_space<vmem>>, vector<1x128xf32>
    %14 = arith.mulf %5, %5 : vector<16x128xf32>
    %cst_13 = arith.constant dense<0.000000e+00> : vector<128xf32>
    %15 = vector.multi_reduction <add>, %14, %cst_13 [0] : vector<16x128xf32> to vector<128xf32>
    %16 = vector.shape_cast %15 : vector<128xf32> to vector<1x128xf32>
    %17 = arith.addf %13, %16 : vector<1x128xf32>
    %c0_14 = arith.constant 0 : index
    %c0_15 = arith.constant 0 : index
    %18 = vector.load %arg5[%c0_14, %c0_15] : memref<1x128xf32, #tpu.memory_space<vmem>>, vector<1x128xf32>
    tpu.vector_store %arg5[%c0_14, %c0_15], %17 {strides = array<i32>} : memref<1x128xf32, #tpu.memory_space<vmem>>, vector<1x128xf32>,
    return
  }
  func.func @transform_0(%arg0: i32) -> (i32, i32) {
    %c0_i32 = arith.constant 0 : i32
    %c0_i32_0 = arith.constant 0 : i32
    return %arg0, %c0_i32 : i32, i32
  }
  func.func @transform_1(%arg0: i32) -> (i32, i32) {
    %c0_i32 = arith.constant 0 : i32
    %c0_i32_0 = arith.constant 0 : i32
    %c0_i32_1 = arith.constant 0 : i32
    return %c0_i32, %c0_i32_0 : i32, i32
  }
  func.func @transform_2(%arg0: i32) -> (i32, i32) {
    %c0_i32 = arith.constant 0 : i32
    %c0_i32_0 = arith.constant 0 : i32
    return %arg0, %c0_i32 : i32, i32
  }
  func.func @transform_3(%arg0: i32) -> (i32, i32) {
    %c0_i32 = arith.constant 0 : i32
    %c0_i32_0 = arith.constant 0 : i32
    %c0_i32_1 = arith.constant 0 : i32
    return %c0_i32, %c0_i32_0 : i32, i32
  }
  func.func @transform_4(%arg0: i32) -> (i32, i32) {
    %c0_i32 = arith.constant 0 : i32
    %c0_i32_0 = arith.constant 0 : i32
    %c0_i32_1 = arith.constant 0 : i32
    return %c0_i32, %c0_i32_0 : i32, i32
  }
}

module attributes {stable_mosaic.version = 11 : i64} {
  func.func @_affine_relu_kernel(%arg0: i32, %arg1: memref<16x128xbf16, #tpu.memory_space<vmem>>, %arg2: memref<1x128xf32, #tpu.memory_space<vmem>>, %arg3: memref<1x128xf32, #tpu.memory_space<vmem>>, %arg4: memref<16x128xbf16, #tpu.memory_space<vmem>>) attributes {dimension_semantics = [#tpu.dimension_semantics<parallel>], iteration_bounds = array<i64: 5>, scalar_prefetch = 0 : i64, scratch_operands = 0 : i64, tpu.core_type = #tpu.core_type<tc>, window_params = [{transform_indices = @transform_0, window_bounds = array<i64: 16, 128>}, {pipeline_mode = #tpu.pipeline_mode<synchronous>, transform_indices = @transform_1, window_bounds = array<i64: 1, 128>}, {pipeline_mode = #tpu.pipeline_mode<synchronous>, transform_indices = @transform_2, window_bounds = array<i64: 1, 128>}, {transform_indices = @transform_3, window_bounds = array<i64: 16, 128>}]} {
    %c0 = arith.constant 0 : index
    %c0_0 = arith.constant 0 : index
    %0 = vector.load %arg1[%c0, %c0_0] : memref<16x128xbf16, #tpu.memory_space<vmem>>, vector<16x128xbf16>
    %1 = arith.extf %0 : vector<16x128xbf16> to vector<16x128xf32>
    %c0_1 = arith.constant 0 : index
    %c0_2 = arith.constant 0 : index
    %2 = vector.load %arg2[%c0_1, %c0_2] : memref<1x128xf32, #tpu.memory_space<vmem>>, vector<1x128xf32>
    %3 = vector.broadcast %2 : vector<1x128xf32> to vector<16x128xf32>
    %4 = arith.mulf %1, %3 : vector<16x128xf32>
    %c0_3 = arith.constant 0 : index
    %c0_4 = arith.constant 0 : index
    %5 = vector.load %arg3[%c0_3, %c0_4] : memref<1x128xf32, #tpu.memory_space<vmem>>, vector<1x128xf32>
    %6 = vector.broadcast %5 : vector<1x128xf32> to vector<16x128xf32>
    %7 = arith.addf %4, %6 : vector<16x128xf32>
    %cst = arith.constant 0.000000e+00 : f32
    %8 = vector.broadcast %cst : f32 to vector<16x128xf32>
    %9 = arith.maximumf %7, %8 : vector<16x128xf32>
    %10 = arith.truncf %9 : vector<16x128xf32> to vector<16x128xbf16>
    %c0_5 = arith.constant 0 : index
    %c0_6 = arith.constant 0 : index
    %11 = vector.load %arg4[%c0_5, %c0_6] : memref<16x128xbf16, #tpu.memory_space<vmem>>, vector<16x128xbf16>
    tpu.vector_store %arg4[%c0_5, %c0_6], %10 {strides = array<i32>} : memref<16x128xbf16, #tpu.memory_space<vmem>>, vector<16x128xbf16>,
    return
  }
  func.func @transform_0(%arg0: i32) -> (i32, i32) {
    %c0_i32 = arith.constant 0 : i32
    %c0_i32_0 = arith.constant 0 : i32
    return %arg0, %c0_i32 : i32, i32
  }
  func.func @transform_1(%arg0: i32) -> (i32, i32) {
    %c0_i32 = arith.constant 0 : i32
    %c0_i32_0 = arith.constant 0 : i32
    %c0_i32_1 = arith.constant 0 : i32
    return %c0_i32, %c0_i32_0 : i32, i32
  }
  func.func @transform_2(%arg0: i32) -> (i32, i32) {
    %c0_i32 = arith.constant 0 : i32
    %c0_i32_0 = arith.constant 0 : i32
    %c0_i32_1 = arith.constant 0 : i32
    return %c0_i32, %c0_i32_0 : i32, i32
  }
  func.func @transform_3(%arg0: i32) -> (i32, i32) {
    %c0_i32 = arith.constant 0 : i32
    %c0_i32_0 = arith.constant 0 : i32
    return %arg0, %c0_i32 : i32, i32
  }
}

module attributes {stable_mosaic.version = 11 : i64} {
  func.func @_conv_stats_kernel(%arg0: i32, %arg1: memref<16x128xbf16, #tpu.memory_space<vmem>>, %arg2: memref<128x128xbf16, #tpu.memory_space<vmem>>, %arg3: memref<16x128xbf16, #tpu.memory_space<vmem>>, %arg4: memref<1x128xf32, #tpu.memory_space<vmem>>, %arg5: memref<1x128xf32, #tpu.memory_space<vmem>>) attributes {dimension_semantics = [#tpu.dimension_semantics<arbitrary>], iteration_bounds = array<i64: 2>, scalar_prefetch = 0 : i64, scratch_operands = 0 : i64, tpu.core_type = #tpu.core_type<tc>, window_params = [{transform_indices = @transform_0, window_bounds = array<i64: 16, 128>}, {pipeline_mode = #tpu.pipeline_mode<synchronous>, transform_indices = @transform_1, window_bounds = array<i64: 128, 128>}, {transform_indices = @transform_2, window_bounds = array<i64: 16, 128>}, {pipeline_mode = #tpu.pipeline_mode<synchronous>, transform_indices = @transform_3, window_bounds = array<i64: 1, 128>}, {pipeline_mode = #tpu.pipeline_mode<synchronous>, transform_indices = @transform_4, window_bounds = array<i64: 1, 128>}]} {
    %c0_i32 = arith.constant 0 : i32
    %0 = arith.cmpi eq, %arg0, %c0_i32 : i32
    %1 = arith.extui %0 : i1 to i32
    %c0_i32_0 = arith.constant 0 : i32
    %2 = arith.cmpi ne, %1, %c0_i32_0 : i32
    scf.if %2 {
      %cst_16 = arith.constant 0.000000e+00 : f32
      %19 = vector.broadcast %cst_16 : f32 to vector<1x128xf32>
      %c0_17 = arith.constant 0 : index
      %c0_18 = arith.constant 0 : index
      %20 = vector.load %arg4[%c0_17, %c0_18] : memref<1x128xf32, #tpu.memory_space<vmem>>, vector<1x128xf32>
      tpu.vector_store %arg4[%c0_17, %c0_18], %19 {strides = array<i32>} : memref<1x128xf32, #tpu.memory_space<vmem>>, vector<1x128xf32>,
      %cst_19 = arith.constant 0.000000e+00 : f32
      %21 = vector.broadcast %cst_19 : f32 to vector<1x128xf32>
      %c0_20 = arith.constant 0 : index
      %c0_21 = arith.constant 0 : index
      %22 = vector.load %arg5[%c0_20, %c0_21] : memref<1x128xf32, #tpu.memory_space<vmem>>, vector<1x128xf32>
      tpu.vector_store %arg5[%c0_20, %c0_21], %21 {strides = array<i32>} : memref<1x128xf32, #tpu.memory_space<vmem>>, vector<1x128xf32>,
    } else {
    }
    %c0 = arith.constant 0 : index
    %c0_1 = arith.constant 0 : index
    %3 = vector.load %arg1[%c0, %c0_1] : memref<16x128xbf16, #tpu.memory_space<vmem>>, vector<16x128xbf16>
    %c0_2 = arith.constant 0 : index
    %c0_3 = arith.constant 0 : index
    %4 = vector.load %arg2[%c0_2, %c0_3] : memref<128x128xbf16, #tpu.memory_space<vmem>>, vector<128x128xbf16>
    %cst = arith.constant dense<0.000000e+00> : vector<16x128xf32>
    %5 = tpu.matmul %3, %4, %cst {dimension_numbers = #tpu.dot_dimension_numbers<[1], [0], [0], [1], [0, 0, 1, 1], [], []>} : vector<16x128xbf16>, vector<128x128xbf16>, vector<16x128xf32> -> vector<16x128xf32>
    %6 = arith.truncf %5 : vector<16x128xf32> to vector<16x128xbf16>
    %c0_4 = arith.constant 0 : index
    %c0_5 = arith.constant 0 : index
    %7 = vector.load %arg3[%c0_4, %c0_5] : memref<16x128xbf16, #tpu.memory_space<vmem>>, vector<16x128xbf16>
    tpu.vector_store %arg3[%c0_4, %c0_5], %6 {strides = array<i32>} : memref<16x128xbf16, #tpu.memory_space<vmem>>, vector<16x128xbf16>,
    %c0_6 = arith.constant 0 : index
    %c0_7 = arith.constant 0 : index
    %8 = vector.load %arg4[%c0_6, %c0_7] : memref<1x128xf32, #tpu.memory_space<vmem>>, vector<1x128xf32>
    %cst_8 = arith.constant dense<0.000000e+00> : vector<128xf32>
    %9 = vector.multi_reduction <add>, %5, %cst_8 [0] : vector<16x128xf32> to vector<128xf32>
    %10 = vector.shape_cast %9 : vector<128xf32> to vector<1x128xf32>
    %11 = arith.addf %8, %10 : vector<1x128xf32>
    %c0_9 = arith.constant 0 : index
    %c0_10 = arith.constant 0 : index
    %12 = vector.load %arg4[%c0_9, %c0_10] : memref<1x128xf32, #tpu.memory_space<vmem>>, vector<1x128xf32>
    tpu.vector_store %arg4[%c0_9, %c0_10], %11 {strides = array<i32>} : memref<1x128xf32, #tpu.memory_space<vmem>>, vector<1x128xf32>,
    %c0_11 = arith.constant 0 : index
    %c0_12 = arith.constant 0 : index
    %13 = vector.load %arg5[%c0_11, %c0_12] : memref<1x128xf32, #tpu.memory_space<vmem>>, vector<1x128xf32>
    %14 = arith.mulf %5, %5 : vector<16x128xf32>
    %cst_13 = arith.constant dense<0.000000e+00> : vector<128xf32>
    %15 = vector.multi_reduction <add>, %14, %cst_13 [0] : vector<16x128xf32> to vector<128xf32>
    %16 = vector.shape_cast %15 : vector<128xf32> to vector<1x128xf32>
    %17 = arith.addf %13, %16 : vector<1x128xf32>
    %c0_14 = arith.constant 0 : index
    %c0_15 = arith.constant 0 : index
    %18 = vector.load %arg5[%c0_14, %c0_15] : memref<1x128xf32, #tpu.memory_space<vmem>>, vector<1x128xf32>
    tpu.vector_store %arg5[%c0_14, %c0_15], %17 {strides = array<i32>} : memref<1x128xf32, #tpu.memory_space<vmem>>, vector<1x128xf32>,
    return
  }
  func.func @transform_0(%arg0: i32) -> (i32, i32) {
    %c0_i32 = arith.constant 0 : i32
    %c0_i32_0 = arith.constant 0 : i32
    return %arg0, %c0_i32 : i32, i32
  }
  func.func @transform_1(%arg0: i32) -> (i32, i32) {
    %c0_i32 = arith.constant 0 : i32
    %c0_i32_0 = arith.constant 0 : i32
    %c0_i32_1 = arith.constant 0 : i32
    return %c0_i32, %c0_i32_0 : i32, i32
  }
  func.func @transform_2(%arg0: i32) -> (i32, i32) {
    %c0_i32 = arith.constant 0 : i32
    %c0_i32_0 = arith.constant 0 : i32
    return %arg0, %c0_i32 : i32, i32
  }
  func.func @transform_3(%arg0: i32) -> (i32, i32) {
    %c0_i32 = arith.constant 0 : i32
    %c0_i32_0 = arith.constant 0 : i32
    %c0_i32_1 = arith.constant 0 : i32
    return %c0_i32, %c0_i32_0 : i32, i32
  }
  func.func @transform_4(%arg0: i32) -> (i32, i32) {
    %c0_i32 = arith.constant 0 : i32
    %c0_i32_0 = arith.constant 0 : i32
    %c0_i32_1 = arith.constant 0 : i32
    return %c0_i32, %c0_i32_0 : i32, i32
  }
}

module attributes {stable_mosaic.version = 11 : i64} {
  func.func @_affine_relu_kernel(%arg0: i32, %arg1: memref<16x128xbf16, #tpu.memory_space<vmem>>, %arg2: memref<1x128xf32, #tpu.memory_space<vmem>>, %arg3: memref<1x128xf32, #tpu.memory_space<vmem>>, %arg4: memref<16x128xbf16, #tpu.memory_space<vmem>>) attributes {dimension_semantics = [#tpu.dimension_semantics<parallel>], iteration_bounds = array<i64: 2>, scalar_prefetch = 0 : i64, scratch_operands = 0 : i64, tpu.core_type = #tpu.core_type<tc>, window_params = [{transform_indices = @transform_0, window_bounds = array<i64: 16, 128>}, {pipeline_mode = #tpu.pipeline_mode<synchronous>, transform_indices = @transform_1, window_bounds = array<i64: 1, 128>}, {pipeline_mode = #tpu.pipeline_mode<synchronous>, transform_indices = @transform_2, window_bounds = array<i64: 1, 128>}, {transform_indices = @transform_3, window_bounds = array<i64: 16, 128>}]} {
    %c0 = arith.constant 0 : index
    %c0_0 = arith.constant 0 : index
    %0 = vector.load %arg1[%c0, %c0_0] : memref<16x128xbf16, #tpu.memory_space<vmem>>, vector<16x128xbf16>
    %1 = arith.extf %0 : vector<16x128xbf16> to vector<16x128xf32>
    %c0_1 = arith.constant 0 : index
    %c0_2 = arith.constant 0 : index
    %2 = vector.load %arg2[%c0_1, %c0_2] : memref<1x128xf32, #tpu.memory_space<vmem>>, vector<1x128xf32>
    %3 = vector.broadcast %2 : vector<1x128xf32> to vector<16x128xf32>
    %4 = arith.mulf %1, %3 : vector<16x128xf32>
    %c0_3 = arith.constant 0 : index
    %c0_4 = arith.constant 0 : index
    %5 = vector.load %arg3[%c0_3, %c0_4] : memref<1x128xf32, #tpu.memory_space<vmem>>, vector<1x128xf32>
    %6 = vector.broadcast %5 : vector<1x128xf32> to vector<16x128xf32>
    %7 = arith.addf %4, %6 : vector<16x128xf32>
    %cst = arith.constant 0.000000e+00 : f32
    %8 = vector.broadcast %cst : f32 to vector<16x128xf32>
    %9 = arith.maximumf %7, %8 : vector<16x128xf32>
    %10 = arith.truncf %9 : vector<16x128xf32> to vector<16x128xbf16>
    %c0_5 = arith.constant 0 : index
    %c0_6 = arith.constant 0 : index
    %11 = vector.load %arg4[%c0_5, %c0_6] : memref<16x128xbf16, #tpu.memory_space<vmem>>, vector<16x128xbf16>
    tpu.vector_store %arg4[%c0_5, %c0_6], %10 {strides = array<i32>} : memref<16x128xbf16, #tpu.memory_space<vmem>>, vector<16x128xbf16>,
    return
  }
  func.func @transform_0(%arg0: i32) -> (i32, i32) {
    %c0_i32 = arith.constant 0 : i32
    %c0_i32_0 = arith.constant 0 : i32
    return %arg0, %c0_i32 : i32, i32
  }
  func.func @transform_1(%arg0: i32) -> (i32, i32) {
    %c0_i32 = arith.constant 0 : i32
    %c0_i32_0 = arith.constant 0 : i32
    %c0_i32_1 = arith.constant 0 : i32
    return %c0_i32, %c0_i32_0 : i32, i32
  }
  func.func @transform_2(%arg0: i32) -> (i32, i32) {
    %c0_i32 = arith.constant 0 : i32
    %c0_i32_0 = arith.constant 0 : i32
    %c0_i32_1 = arith.constant 0 : i32
    return %c0_i32, %c0_i32_0 : i32, i32
  }
  func.func @transform_3(%arg0: i32) -> (i32, i32) {
    %c0_i32 = arith.constant 0 : i32
    %c0_i32_0 = arith.constant 0 : i32
    return %arg0, %c0_i32 : i32, i32
  }
}

</mosaic_0001>

<bundles_post_ra>
// kernel: down_forward.6
= control target key start
LH: loop header
LB: loop body
LE: loop exit
PB: predicated region body
PF: predicated region fallthrough
CT: control target
= control target key end

     0   :  { %s28_s8 = smov 64   ;;  %vm20_vm0 = vcmask 519168   ;;  %s51_s0 = inlined_call_operand.vmem [shape: bf16[16,128], index: 0, kind: input, shape index: {}]   ;;  %s52_s1 = inlined_call_operand.vmem [shape: bf16[16,64], index: 1, kind: output, shape index: {}]  }
   0x1   :  { %v8_v0 = vld [vmem:[%s51_s0] sm:$0xf]  ;;  %v9_v1 = vld [vmem:[%s51_s0 + $0x4] sm:$0xf] }
   0x2   :  { %12 = vrot.lane.b32.xlu0 %v8_v0, %s28_s8 }
   0x6   :  { %14 = vrot.lane.b32.xlu0 %v9_v1, %s28_s8 }
  0x74   :  { %v13_v2 = vpop.permute.xlu0 %12 }
  0x75   :  { %v18_v3 = vmax.bf16 %v13_v2, %v8_v0 }
  0x77   :  { %21 = vst.msk [vmem:[%s52_s1] sm:$0xf] %vm20_vm0, %v18_v3 }
  0x78   :  { %v15_v4 = vpop.permute.xlu0 %14 }
  0x79   :  { %v19_v5 = vmax.bf16 %v15_v4, %v9_v1 }
  0x7b   :  { %22 = vst.msk [vmem:[%s52_s1 + $0x4] sm:$0xf] %vm20_vm0, %v19_v5 }

// kernel: down_forward.7
= control target key start
LH: loop header
LB: loop body
LE: loop exit
PB: predicated region body
PF: predicated region fallthrough
CT: control target
= control target key end

     0   :  { %s230_s6 = smov 0   ;;  %s241_s0 = inlined_call_operand.vmem [shape: bf16[128,8], index: 0, kind: input, shape index: {}]   ;;  %s242_s1 = inlined_call_operand.vmem [shape: bf16[128,4], index: 1, kind: output, shape index: {}]  }
   0x1 LB: > { %s191_s7 = sadd.s32 4294967295, %s217_s6   ;;  %p195_p0 = scmp.ge.s32.totalorder %s217_s6, 1  ;;  %s217_s6 = sphi %s230_s6, %s11_s6  }
   0x2   : > { %p88_p1 = scmp.lt.s32.totalorder %s217_s6, 9 }
   0x4   : > { %p89_p2 = pnand %p195_p0, %p88_p1 }
   0x5   : > { %s196_s8 = sshll.u32 (!%p89_p2), %s191_s7, 1  ;;  %s219_s13 = smov (!%p89_p2), 124   ;;  %vm132_vm0 = vcmask (!%p89_p2), 27648  }
   0x6   : > { %92 = sbr.rel (%p89_p2) target bundleno = 139 (0x8b), region = 24  ;;  %p109_p3 = scmp.lt.s32.totalorder (!%p89_p2), %s196_s8, 15 }
   0xd   : > { %s244_s8 = smov (!%p109_p3, %s196_s8), 15 }
   0xe   : > { %s197_s9 = sshll.u32 %s244_s8, 2 }
   0xf   : > { %s112_s12 = scalar_lea.vmem %s241_s0, %s197_s9  ;;  %s118_s16 = scalar_lea.vmem %s242_s1, %s197_s9 }
  0x10   : > { %v120_v0 = vld [vmem:[%s112_s12] sm:$0xf]  ;;  %v121_v1 = vld [vmem:[%s112_s12 + $0x4] sm:$0xf] }
  0x11   : > { %124 = vrot.lane.b32.xlu0 %v120_v0, %s219_s13 }
  0x15   : > { %126 = vrot.lane.b32.xlu0 %v121_v1, %s219_s13 }
  0x83   : > { %v125_v2 = vpop.permute.xlu0 %124 }
  0x84   : > { %v130_v3 = vmax.bf16 %v125_v2, %v120_v0 }
  0x86   : > { %133 = vst.msk [vmem:[%s118_s16] sm:$0xf] %vm132_vm0, %v130_v3 }
  0x87   : > { %v127_v4 = vpop.permute.xlu0 %126 }
  0x88   : > { %v131_v5 = vmax.bf16 %v127_v4, %v121_v1 }
  0x8a   : > { %134 = vst.msk [vmem:[%s118_s16 + $0x4] sm:$0xf] %vm132_vm0, %v131_v5 }
  0x8b PF: > { %s11_s6 = sadd.s32 1, %s217_s6  }
  0x8c   : > { %p8_p4 = scmp.ge.s32.totalorder %s11_s6, 10  }
  0x8e   :  { %10 = sbr.rel (!%p8_p4) target bundleno = 1 (0x1), region = 54 }

// kernel: down_forward.8
= control target key start
LH: loop header
LB: loop body
LE: loop exit
PB: predicated region body
PF: predicated region fallthrough
CT: control target
= control target key end

     0   :  { %s531_s15 = smov 0   ;;  %s596_s0 = inlined_call_operand.vmem [shape: bf16[80,128], index: 0, kind: input, shape index: {}]   ;;  %s597_s1 = inlined_call_operand.vmem [shape: bf16[128,128], index: 1, kind: input, shape index: {}]   ;;  %s598_s2 = inlined_call_operand.vmem [shape: bf16[80,128], index: 2, kind: output, shape index: {0}]   ;;  %s599_s3 = inlined_call_operand.vmem [shape: f32[1,128], index: 3, kind: output, shape index: {1}]   ;;  %s600_s4 = inlined_call_operand.vmem [shape: f32[1,128], index: 4, kind: output, shape index: {2}]  }
   0x1 LB: > { %s416_s16 = sadd.s32 4294967295, %s501_s15   ;;  %p420_p0 = scmp.ge.s32.totalorder %s501_s15, 1  ;;  %s501_s15 = sphi %s531_s15, %s15_s15  }
   0x2   : > { %p158_p1 = scmp.lt.s32.totalorder %s501_s15, 6 }
   0x4   : > { %p159_p2 = pnand %p420_p0, %p158_p1 }
   0x5   : > { %s421_s17 = sshll.u32 (!%p159_p2), %s416_s16, 1  ;;  %p425_p4 = scmp.ne.s32.totalorder (!%p159_p2), %s416_s16, 0 }
   0x6   : > { %162 = sbr.rel (%p159_p2) target bundleno = 286 (0x11e), region = 28  ;;  %p185_p3 = scmp.lt.s32.totalorder (!%p159_p2), %s421_s17, 9 }
   0xd   : > { %s602_s17 = smov (!%p185_p3, %s421_s17), 9  ;;  %200 = sbr.rel (%p425_p4) target bundleno = 20 (0x14), region = 32 }
   0xe   : > { %s422_s18 = sshll.u32 %s602_s17, 2  ;;  %v503_v0 = vmov (!%p425_p4), 0.0  }
   0xf   : > { %s542_s21 = scalar_lea.vmem %s596_s0, %s422_s18  ;;  %s547_s24 = scalar_lea.vmem %s598_s2, %s422_s18  ;;  %201 = vst [vmem:[%s599_s3] sm:$0x1] (!%p425_p4), %v503_v0  ;;  %202 = vst [vmem:[%s600_s4] sm:$0x1] (!%p425_p4), %v503_v0 }
  0x14 PF: > { %v486_v1 = vld [vmem:[%s597_s1] sm:$0xff]   ;;  %v504_v2 = vmov 0.0   ;;  %v487_v3 = vld [vmem:[%s597_s1 + $0x8] sm:$0xff]   ;;  %vm505_vm0 = vmmov 0   ;;  %v488_v4 = vld [vmem:[%s597_s1 + $0x10] sm:$0xff]  }
  0x15   : > { %455 = vmatprep.subr.bf16.mxu0 %v504_v2  ;;  %471 = vmatprep.mubr.msk.bf16.mxu0 %vm505_vm0, %v504_v2  ;;  %v489_v5 = vld [vmem:[%s597_s1 + $0x18] sm:$0xff]   ;;  %v490_v6 = vld [vmem:[%s597_s1 + $0x20] sm:$0xff]   ;;  %v491_v7 = vld [vmem:[%s597_s1 + $0x28] sm:$0xff]  }
  0x16   : > { %456 = vmatpush3.bf16.msra.mxu0 %v486_v1  ;;  %v492_v8 = vld [vmem:[%s597_s1 + $0x30] sm:$0xff]   ;;  %v493_v9 = vld [vmem:[%s597_s1 + $0x38] sm:$0xff]   ;;  %v494_v10 = vld [vmem:[%s542_s21] sm:$0xff]  }
  0x17   : > { %457 = vmatprep.subr.bf16.mxu0 %v504_v2  ;;  %v326_v29 = vld [vmem:[%s599_s3] sm:$0x1] }
  0x18   : > { %v336_v32 = vld [vmem:[%s600_s4] sm:$0x1] }
  0x1a   : > { %458 = vmatpush3.bf16.msra.mxu0 %v487_v3 }
  0x1b   : > { %459 = vmatprep.subr.bf16.mxu0 %v504_v2 }
  0x1e   : > { %460 = vmatpush3.bf16.msra.mxu0 %v488_v4 }
  0x1f   : > { %461 = vmatprep.subr.bf16.mxu0 %v504_v2 }
  0x22   : > { %462 = vmatpush3.bf16.msra.mxu0 %v489_v5 }
  0x23   : > { %463 = vmatprep.subr.bf16.mxu0 %v504_v2 }
  0x26   : > { %464 = vmatpush3.bf16.msra.mxu0 %v490_v6 }
  0x27   : > { %465 = vmatprep.subr.bf16.mxu0 %v504_v2 }
  0x2a   : > { %466 = vmatpush3.bf16.msra.mxu0 %v491_v7 }
  0x2b   : > { %467 = vmatprep.subr.bf16.mxu0 %v504_v2 }
  0x2e   : > { %468 = vmatpush3.bf16.msra.mxu0 %v492_v8 }
  0x2f   : > { %469 = vmatprep.subr.bf16.mxu0 %v504_v2 }
  0x32   : > { %470 = vmatpush3.bf16.msra.mxu0 %v493_v9 }
  0x35   : > { %472 = vmatmul.mubr.bf16.vlgmr.msra.gmra.mrb[0].mxu0 %v494_v10 }
 0x108   : > { %v309_v11 = vpop.f32.mrb[0].mxu0 }
 0x109   : > { %v473_v12 = vpop.f32.mrb[1].mxu0  ;;  %v337_v14 = vmul.f32 %v309_v11, %v309_v11 }
 0x10a   : > { %v312_v13 = vpop.f32.mrb[2].mxu0 }
 0x10b   : > { %v444_v15 = vpack.c.bf16 %v312_v13, %v309_v11  ;;  %v327_v16 = vadd.f32 %v312_v13, %v309_v11  ;;  %v338_v17 = vmul.f32 %v312_v13, %v312_v13  ;;  %v474_v18 = vpop.f32.mrb[3].mxu0 }
 0x10d   : > { %445 = vst [vmem:[%s547_s24] sm:$0xff] %v444_v15   ;;  %v328_v19 = vrot.slane %v327_v16, 4  ;;  %v339_v20 = vadd.f32 %v338_v17, %v337_v14 }
 0x10f   : > { %v329_v21 = vadd.f32 %v328_v19, %v327_v16  ;;  %v340_v22 = vrot.slane %v339_v20, 4 }
 0x111   : > { %v330_v23 = vrot.slane %v329_v21, 2  ;;  %v341_v24 = vadd.f32 %v340_v22, %v339_v20 }
 0x113   : > { %v331_v25 = vadd.f32 %v330_v23, %v329_v21  ;;  %v342_v26 = vrot.slane %v341_v24, 2 }
 0x115   : > { %v332_v27 = vrot.slane %v331_v25, 1  ;;  %v343_v28 = vadd.f32 %v342_v26, %v341_v24 }
 0x117   : > { %v333_v30 = vadd.f32 %v332_v27, %v331_v25  ;;  %v344_v31 = vrot.slane %v343_v28, 1 }
 0x119   : > { %v334_v33 = vadd.f32 %v333_v30, %v326_v29  ;;  %v345_v34 = vadd.f32 %v344_v31, %v343_v28 }
 0x11b   : > { %335 = vst [vmem:[%s599_s3] sm:$0x1] %v334_v33  ;;  %v346_v35 = vadd.f32 %v345_v34, %v336_v32 }
 0x11d   : > { %347 = vst [vmem:[%s600_s4] sm:$0x1] %v346_v35 }
 0x11e PF: > { %s15_s15 = sadd.s32 1, %s501_s15  }
 0x11f   : > { %p12_p5 = scmp.ge.s32.totalorder %s15_s15, 7  }
 0x121   :  { %14 = sbr.rel (!%p12_p5) target bundleno = 1 (0x1), region = 78 }

// kernel: down_forward.9
= control target key start
LH: loop header
LB: loop body
LE: loop exit
PB: predicated region body
PF: predicated region fallthrough
CT: control target
= control target key end

     0   :  { %s326_s12 = smov 0   ;;  %s343_s0 = inlined_call_operand.vmem [shape: bf16[80,128], index: 0, kind: input, shape index: {}]   ;;  %s344_s1 = inlined_call_operand.vmem [shape: f32[1,128], index: 1, kind: input, shape index: {}]   ;;  %s345_s2 = inlined_call_operand.vmem [shape: f32[1,128], index: 2, kind: input, shape index: {}]   ;;  %s346_s3 = inlined_call_operand.vmem [shape: bf16[80,128], index: 3, kind: output, shape index: {}]  }
   0x1 LB: > { %s264_s13 = sadd.s32 4294967295, %s304_s12   ;;  %p268_p0 = scmp.ge.s32.totalorder %s304_s12, 1  ;;  %s304_s12 = sphi %s326_s12, %s13_s12  }
   0x2   : > { %p138_p1 = scmp.lt.s32.totalorder %s304_s12, 6 }
   0x4   : > { %p139_p2 = pnand %p268_p0, %p138_p1 }
   0x5   : > { %s269_s14 = sshll.u32 (!%p139_p2), %s264_s13, 1  ;;  %v273_v1 = vld [vmem:[%s344_s1] ss:$0 sm:$0xff] (!%p139_p2) }
   0x6   : > { %142 = sbr.rel (%p139_p2) target bundleno = 28 (0x1c), region = 32  ;;  %p163_p3 = scmp.lt.s32.totalorder (!%p139_p2), %s269_s14, 9  ;;  %v274_v4 = vld [vmem:[%s345_s2] ss:$0 sm:$0xff] (!%p139_p2) }
   0xd   : > { %s348_s14 = smov (!%p163_p3, %s269_s14), 9 }
   0xe   : > { %s270_s15 = sshll.u32 %s348_s14, 2 }
   0xf   : > { %s166_s18 = scalar_lea.vmem %s343_s0, %s270_s15  ;;  %s172_s25 = scalar_lea.vmem %s346_s3, %s270_s15 }
  0x10   : > { %v282_v0 = vld [vmem:[%s166_s18] sm:$0xff]  }
  0x11   : > { %v283_v2 = vunpack.c.l.bf16 %v282_v0  ;;  %v284_v3 = vunpack.c.h.bf16 %v282_v0 }
  0x13   : > { %v185_v5 = vmul.f32 %v283_v2, %v273_v1  ;;  %v186_v6 = vmul.f32 %v284_v3, %v273_v1 }
  0x15   : > { %v194_v7 = vadd.f32 %v274_v4, %v185_v5  ;;  %v195_v8 = vadd.f32 %v274_v4, %v186_v6 }
  0x17   : > { %v196_v9 = vmax.f32 %v194_v7, 0.0  ;;  %v197_v10 = vmax.f32 %v195_v8, 0.0 }
  0x19   : > { %v288_v11 = vpack.c.bf16 %v197_v10, %v196_v9 }
  0x1b   : > { %289 = vst [vmem:[%s172_s25] sm:$0xff] %v288_v11  }
  0x1c PF: > { %s13_s12 = sadd.s32 1, %s304_s12  }
  0x1d   : > { %p10_p4 = scmp.ge.s32.totalorder %s13_s12, 7  }
  0x1f   :  { %12 = sbr.rel (!%p10_p4) target bundleno = 1 (0x1), region = 62 }

// kernel: down_forward.10
= control target key start
LH: loop header
LB: loop body
LE: loop exit
PB: predicated region body
PF: predicated region fallthrough
CT: control target
= control target key end

     0   :  { %s531_s15 = smov 0   ;;  %s596_s0 = inlined_call_operand.vmem [shape: bf16[32,128], index: 0, kind: input, shape index: {}]   ;;  %s597_s1 = inlined_call_operand.vmem [shape: bf16[128,128], index: 1, kind: input, shape index: {}]   ;;  %s598_s2 = inlined_call_operand.vmem [shape: bf16[32,128], index: 2, kind: output, shape index: {0}]   ;;  %s599_s3 = inlined_call_operand.vmem [shape: f32[1,128], index: 3, kind: output, shape index: {1}]   ;;  %s600_s4 = inlined_call_operand.vmem [shape: f32[1,128], index: 4, kind: output, shape index: {2}]  }
   0x1 LB: > { %s416_s16 = sadd.s32 4294967295, %s501_s15   ;;  %p420_p0 = scmp.ge.s32.totalorder %s501_s15, 1  ;;  %s501_s15 = sphi %s531_s15, %s15_s15  }
   0x2   : > { %p158_p1 = scmp.lt.s32.totalorder %s501_s15, 3 }
   0x4   : > { %p159_p2 = pnand %p420_p0, %p158_p1 }
   0x5   : > { %s421_s17 = sshll.u32 (!%p159_p2), %s416_s16, 1  ;;  %p425_p4 = scmp.ne.s32.totalorder (!%p159_p2), %s416_s16, 0 }
   0x6   : > { %162 = sbr.rel (%p159_p2) target bundleno = 286 (0x11e), region = 28  ;;  %p185_p3 = scmp.lt.s32.totalorder (!%p159_p2), %s421_s17, 3 }
   0xd   : > { %s602_s17 = smov (!%p185_p3, %s421_s17), 3  ;;  %200 = sbr.rel (%p425_p4) target bundleno = 20 (0x14), region = 32 }
   0xe   : > { %s422_s18 = sshll.u32 %s602_s17, 2  ;;  %v503_v0 = vmov (!%p425_p4), 0.0  }
   0xf   : > { %s542_s21 = scalar_lea.vmem %s596_s0, %s422_s18  ;;  %s547_s24 = scalar_lea.vmem %s598_s2, %s422_s18  ;;  %201 = vst [vmem:[%s599_s3] sm:$0x1] (!%p425_p4), %v503_v0  ;;  %202 = vst [vmem:[%s600_s4] sm:$0x1] (!%p425_p4), %v503_v0 }
  0x14 PF: > { %v486_v1 = vld [vmem:[%s597_s1] sm:$0xff]   ;;  %v504_v2 = vmov 0.0   ;;  %v487_v3 = vld [vmem:[%s597_s1 + $0x8] sm:$0xff]   ;;  %vm505_vm0 = vmmov 0   ;;  %v488_v4 = vld [vmem:[%s597_s1 + $0x10] sm:$0xff]  }
  0x15   : > { %455 = vmatprep.subr.bf16.mxu0 %v504_v2  ;;  %471 = vmatprep.mubr.msk.bf16.mxu0 %vm505_vm0, %v504_v2  ;;  %v489_v5 = vld [vmem:[%s597_s1 + $0x18] sm:$0xff]   ;;  %v490_v6 = vld [vmem:[%s597_s1 + $0x20] sm:$0xff]   ;;  %v491_v7 = vld [vmem:[%s597_s1 + $0x28] sm:$0xff]  }
  0x16   : > { %456 = vmatpush3.bf16.msra.mxu0 %v486_v1  ;;  %v492_v8 = vld [vmem:[%s597_s1 + $0x30] sm:$0xff]   ;;  %v493_v9 = vld [vmem:[%s597_s1 + $0x38] sm:$0xff]   ;;  %v494_v10 = vld [vmem:[%s542_s21] sm:$0xff]  }
  0x17   : > { %457 = vmatprep.subr.bf16.mxu0 %v504_v2  ;;  %v326_v29 = vld [vmem:[%s599_s3] sm:$0x1] }
  0x18   : > { %v336_v32 = vld [vmem:[%s600_s4] sm:$0x1] }
  0x1a   : > { %458 = vmatpush3.bf16.msra.mxu0 %v487_v3 }
  0x1b   : > { %459 = vmatprep.subr.bf16.mxu0 %v504_v2 }
  0x1e   : > { %460 = vmatpush3.bf16.msra.mxu0 %v488_v4 }
  0x1f   : > { %461 = vmatprep.subr.bf16.mxu0 %v504_v2 }
  0x22   : > { %462 = vmatpush3.bf16.msra.mxu0 %v489_v5 }
  0x23   : > { %463 = vmatprep.subr.bf16.mxu0 %v504_v2 }
  0x26   : > { %464 = vmatpush3.bf16.msra.mxu0 %v490_v6 }
  0x27   : > { %465 = vmatprep.subr.bf16.mxu0 %v504_v2 }
  0x2a   : > { %466 = vmatpush3.bf16.msra.mxu0 %v491_v7 }
  0x2b   : > { %467 = vmatprep.subr.bf16.mxu0 %v504_v2 }
  0x2e   : > { %468 = vmatpush3.bf16.msra.mxu0 %v492_v8 }
  0x2f   : > { %469 = vmatprep.subr.bf16.mxu0 %v504_v2 }
  0x32   : > { %470 = vmatpush3.bf16.msra.mxu0 %v493_v9 }
  0x35   : > { %472 = vmatmul.mubr.bf16.vlgmr.msra.gmra.mrb[0].mxu0 %v494_v10 }
 0x108   : > { %v309_v11 = vpop.f32.mrb[0].mxu0 }
 0x109   : > { %v473_v12 = vpop.f32.mrb[1].mxu0  ;;  %v337_v14 = vmul.f32 %v309_v11, %v309_v11 }
 0x10a   : > { %v312_v13 = vpop.f32.mrb[2].mxu0 }
 0x10b   : > { %v444_v15 = vpack.c.bf16 %v312_v13, %v309_v11  ;;  %v327_v16 = vadd.f32 %v312_v13, %v309_v11  ;;  %v338_v17 = vmul.f32 %v312_v13, %v312_v13  ;;  %v474_v18 = vpop.f32.mrb[3].mxu0 }
 0x10d   : > { %445 = vst [vmem:[%s547_s24] sm:$0xff] %v444_v15   ;;  %v328_v19 = vrot.slane %v327_v16, 4  ;;  %v339_v20 = vadd.f32 %v338_v17, %v337_v14 }
 0x10f   : > { %v329_v21 = vadd.f32 %v328_v19, %v327_v16  ;;  %v340_v22 = vrot.slane %v339_v20, 4 }
 0x111   : > { %v330_v23 = vrot.slane %v329_v21, 2  ;;  %v341_v24 = vadd.f32 %v340_v22, %v339_v20 }
 0x113   : > { %v331_v25 = vadd.f32 %v330_v23, %v329_v21  ;;  %v342_v26 = vrot.slane %v341_v24, 2 }
 0x115   : > { %v332_v27 = vrot.slane %v331_v25, 1  ;;  %v343_v28 = vadd.f32 %v342_v26, %v341_v24 }
 0x117   : > { %v333_v30 = vadd.f32 %v332_v27, %v331_v25  ;;  %v344_v31 = vrot.slane %v343_v28, 1 }
 0x119   : > { %v334_v33 = vadd.f32 %v333_v30, %v326_v29  ;;  %v345_v34 = vadd.f32 %v344_v31, %v343_v28 }
 0x11b   : > { %335 = vst [vmem:[%s599_s3] sm:$0x1] %v334_v33  ;;  %v346_v35 = vadd.f32 %v345_v34, %v336_v32 }
 0x11d   : > { %347 = vst [vmem:[%s600_s4] sm:$0x1] %v346_v35 }
 0x11e PF: > { %s15_s15 = sadd.s32 1, %s501_s15  }
 0x11f   : > { %p12_p5 = scmp.ge.s32.totalorder %s15_s15, 4  }
 0x121   :  { %14 = sbr.rel (!%p12_p5) target bundleno = 1 (0x1), region = 78 }

// kernel: down_forward.11
= control target key start
LH: loop header
LB: loop body
LE: loop exit
PB: predicated region body
PF: predicated region fallthrough
CT: control target
= control target key end

     0   :  { %s326_s12 = smov 0   ;;  %s343_s0 = inlined_call_operand.vmem [shape: bf16[32,128], index: 0, kind: input, shape index: {}]   ;;  %s344_s1 = inlined_call_operand.vmem [shape: f32[1,128], index: 1, kind: input, shape index: {}]   ;;  %s345_s2 = inlined_call_operand.vmem [shape: f32[1,128], index: 2, kind: input, shape index: {}]   ;;  %s346_s3 = inlined_call_operand.vmem [shape: bf16[32,128], index: 3, kind: output, shape index: {}]  }
   0x1 LB: > { %s264_s13 = sadd.s32 4294967295, %s304_s12   ;;  %p268_p0 = scmp.ge.s32.totalorder %s304_s12, 1  ;;  %s304_s12 = sphi %s326_s12, %s13_s12  }
   0x2   : > { %p138_p1 = scmp.lt.s32.totalorder %s304_s12, 3 }
   0x4   : > { %p139_p2 = pnand %p268_p0, %p138_p1 }
   0x5   : > { %s269_s14 = sshll.u32 (!%p139_p2), %s264_s13, 1  ;;  %v273_v1 = vld [vmem:[%s344_s1] ss:$0 sm:$0xff] (!%p139_p2) }
   0x6   : > { %142 = sbr.rel (%p139_p2) target bundleno = 28 (0x1c), region = 32  ;;  %p163_p3 = scmp.lt.s32.totalorder (!%p139_p2), %s269_s14, 3  ;;  %v274_v4 = vld [vmem:[%s345_s2] ss:$0 sm:$0xff] (!%p139_p2) }
   0xd   : > { %s348_s14 = smov (!%p163_p3, %s269_s14), 3 }
   0xe   : > { %s270_s15 = sshll.u32 %s348_s14, 2 }
   0xf   : > { %s166_s18 = scalar_lea.vmem %s343_s0, %s270_s15  ;;  %s172_s25 = scalar_lea.vmem %s346_s3, %s270_s15 }
  0x10   : > { %v282_v0 = vld [vmem:[%s166_s18] sm:$0xff]  }
  0x11   : > { %v283_v2 = vunpack.c.l.bf16 %v282_v0  ;;  %v284_v3 = vunpack.c.h.bf16 %v282_v0 }
  0x13   : > { %v185_v5 = vmul.f32 %v283_v2, %v273_v1  ;;  %v186_v6 = vmul.f32 %v284_v3, %v273_v1 }
  0x15   : > { %v194_v7 = vadd.f32 %v274_v4, %v185_v5  ;;  %v195_v8 = vadd.f32 %v274_v4, %v186_v6 }
  0x17   : > { %v196_v9 = vmax.f32 %v194_v7, 0.0  ;;  %v197_v10 = vmax.f32 %v195_v8, 0.0 }
  0x19   : > { %v288_v11 = vpack.c.bf16 %v197_v10, %v196_v9 }
  0x1b   : > { %289 = vst [vmem:[%s172_s25] sm:$0xff] %v288_v11  }
  0x1c PF: > { %s13_s12 = sadd.s32 1, %s304_s12  }
  0x1d   : > { %p10_p4 = scmp.ge.s32.totalorder %s13_s12, 4  }
  0x1f   :  { %12 = sbr.rel (!%p10_p4) target bundleno = 1 (0x1), region = 62 }

</bundles_post_ra>
